<compile_context>
chip_gen: v5e
topology: v5e:2x2
jax: 0.10.0
libtpu: 0.0.40
codegen_flags: <defaults>
</compile_context>

<pallas_src>
import functools
import math

import jax
import jax.numpy as jnp
from jax import lax
from jax.experimental import pallas as pl
from jax.experimental.pallas import tpu as pltpu


def _mlp_kernel(x_ref, w1_ref, b1_ref, w2_ref, b2_ref, w3t_ref, b3_ref, o_ref,
                *, tc):
    # x_ref: (2, TB) -- batch on lanes.  o_ref: (2, TB).
    # Weights use constant index_maps (VMEM-resident); load them once.
    w1 = w1_ref[...].astype(jnp.float32)     # (64, 2)
    b1 = b1_ref[...]                         # (64, 1) f32
    w2 = w2_ref[...].astype(jnp.float32)     # (64, 64)
    b2 = b2_ref[...]                         # (64, 1)
    w3t = w3t_ref[...].astype(jnp.float32)   # (64, 2)
    b3 = b3_ref[...]                         # (2, 1)

    n_chunks = x_ref.shape[1] // tc          # static

    def chunk(c, carry):
        start = pl.multiple_of(c * tc, tc)
        xt = x_ref[:, pl.ds(start, tc)].astype(jnp.float32)       # (2, tc)

        # fc1 (K=2): VPU outer product -- a depth-2 MXU pass would be ~empty.
        h1 = w1[:, 0:1] * xt[0:1, :] + w1[:, 1:2] * xt[1:2, :] + b1
        h1 = jnp.maximum(h1, 0.0)                                 # (64, tc)
        # dropout1: identity at inference.

        # fc2: the only real matmul (64x64) on the MXU, f32 accumulation.
        h2 = jnp.dot(w2, h1, preferred_element_type=jnp.float32) + b2
        h2 = jnp.maximum(h2, 0.0)                                 # (64, tc)
        # dropout2: identity at inference.

        # fc3 (M=2): VPU multiply + XLU sublane reduce instead of an M=2 matmul.
        o0 = jnp.sum(h2 * w3t[:, 0:1], axis=0, keepdims=True)     # (1, tc)
        o1 = jnp.sum(h2 * w3t[:, 1:2], axis=0, keepdims=True)     # (1, tc)
        out = jnp.concatenate([o0, o1], axis=0) + b3              # (2, tc)

        o_ref[:, pl.ds(start, tc)] = out.astype(o_ref.dtype)
        return carry

    lax.fori_loop(0, n_chunks, chunk, 0)


def _round_up(n, m):
    return ((n + m - 1) // m) * m


_LANE = 128      # vreg lane width
_TB_MAX = 8192   # grid-tile columns (review sweep range 4096-8192)
_TC_MAX = 256    # inner chunk columns: keeps h1+h2 (~32 vregs) in registers


def _choose_tiling(B):
    """Return (B_pad, TB, TC) with B_pad % TB == 0 and TB % TC == 0.

    Whenever B >= 2 lane-groups (256), the grid has >= 2 steps so the
    "parallel" batch axis can be sharded across v7x's two TensorCores."""
    B_pad = _round_up(max(B, 1), _LANE)
    if B_pad <= _LANE:
        return B_pad, B_pad, B_pad
    steps = max(2, pl.cdiv(B_pad, _TB_MAX))
    quantum = _TC_MAX if B_pad >= 2 * _TC_MAX else _LANE
    TB = min(_TB_MAX, _round_up(pl.cdiv(B_pad, steps), quantum))
    TC = min(_TC_MAX, TB)
    B_pad = _round_up(B_pad, TB)
    return B_pad, TB, TC


def two_moons_forward_lanes(x_lanes, params, *, out_dtype=jnp.float32):
    """Fused forward pass in the batch-on-lanes layout.

    x_lanes: (2, B) array (any float dtype; bf16 halves input HBM traffic).
    Returns (2, B) logits in `out_dtype`.  Preferred entry point: when B is a
    multiple of 128 there are zero wrapper-side HBM passes."""
    D, B = x_lanes.shape
    assert D == 2, "TwoMoonsModel expects 2 input features"

    w1, b1 = params["w1"], params["b1"]       # (64, 2),  (64, 1)
    w2, b2 = params["w2"], params["b2"]       # (64, 64), (64, 1)
    w3t, b3 = params["w3t"], params["b3"]     # (64, 2),  (2, 1)

    B_pad, TB, TC = _choose_tiling(B)
    if B_pad != B:
        x_lanes = jnp.pad(x_lanes, ((0, 0), (0, B_pad - B)))
    grid = (B_pad // TB,)

    def resident(a):
        return pl.BlockSpec(a.shape, lambda i: (0,) * a.ndim)

    flops = 2 * B_pad * (2 * 64 + 64 * 64 + 64 * 2)
    bytes_accessed = (
        x_lanes.size * x_lanes.dtype.itemsize
        + 2 * B_pad * jnp.dtype(out_dtype).itemsize
        + sum(a.size * a.dtype.itemsize for a in (w1, b1, w2, b2, w3t, b3)))

    out = pl.pallas_call(
        functools.partial(_mlp_kernel, tc=TC),
        out_shape=jax.ShapeDtypeStruct((2, B_pad), out_dtype),
        grid=grid,
        in_specs=[
            pl.BlockSpec((2, TB), lambda i: (0, i)),   # x tile, batch on lanes
            resident(w1), resident(b1),
            resident(w2), resident(b2),
            resident(w3t), resident(b3),
        ],
        out_specs=pl.BlockSpec((2, TB), lambda i: (0, i)),
        compiler_params=pltpu.CompilerParams(
            dimension_semantics=("parallel",)),
        cost_estimate=pl.CostEstimate(
            flops=flops, transcendentals=0, bytes_accessed=bytes_accessed),
    )(x_lanes, w1, b1, w2, b2, w3t, b3)

    return out if B_pad == B else out[:, :B]


def two_moons_forward(x, params, *, out_dtype=jnp.float32):
    """PyTorch-layout convenience wrapper: x (B, 2) -> logits (B, 2).

    NOTE: the transposes here are extra HBM layout-plumbing passes; producers
    and consumers that can use (2, B) should call two_moons_forward_lanes."""
    B, D = x.shape
    assert D == 2, "TwoMoonsModel expects 2 input features"
    return two_moons_forward_lanes(x.T, params, out_dtype=out_dtype).T


def init_two_moons_params(key):
    """PyTorch nn.Linear default init: U(-1/sqrt(fan_in), +1/sqrt(fan_in)).

    fc1/fc2 weights are stored (out, in) because the kernel computes h = W @ x
    in the batch-on-lanes layout; fc3 is stored transposed (in, out) for the
    multiply+reduce path.  All f32: weights are VMEM-resident and tiny, so
    bf16 has no traffic benefit and f32 keeps numerics tight."""
    def linear_init(k, fan_in, fan_out):
        kw, kb = jax.random.split(k)
        bound = 1.0 / math.sqrt(fan_in)
        w = jax.random.uniform(kw, (fan_out, fan_in), jnp.float32, -bound, bound)
        b = jax.random.uniform(kb, (fan_out, 1), jnp.float32, -bound, bound)
        return w, b

    k1, k2, k3 = jax.random.split(key, 3)
    w1, b1 = linear_init(k1, 2, 64)
    w2, b2 = linear_init(k2, 64, 64)
    w3, b3 = linear_init(k3, 64, 2)
    return {"w1": w1, "b1": b1, "w2": w2, "b2": b2,
            "w3t": jnp.asarray(w3.T), "b3": b3}


def _reference_forward(x, params):
    """Pure-JAX f32 reference in the standard (B, F) layout."""
    h1 = jnp.maximum(x @ params["w1"].T + params["b1"][:, 0], 0.0)
    h2 = jnp.maximum(h1 @ params["w2"].T + params["b2"][:, 0], 0.0)
    return h2 @ params["w3t"] + params["b3"][:, 0]


if __name__ == "__main__":
    key = jax.random.PRNGKey(0)
    k_x, k_p = jax.random.split(key)

    batch = 8
    x = jax.random.normal(k_x, (batch, 2), dtype=jnp.float32)
    params = init_two_moons_params(k_p)
    ref = _reference_forward(x, params)

    # Preferred producer/consumer path: batch-on-lanes, no wrapper plumbing.
    out_lanes = jax.block_until_ready(two_moons_forward_lanes(x.T, params))
    assert out_lanes.shape == (2, batch)
    assert jnp.allclose(out_lanes.T, ref, atol=1e-4, rtol=1e-4), (
        jnp.max(jnp.abs(out_lanes.T - ref)))

    # PyTorch-layout convenience wrapper.
    out = jax.block_until_ready(two_moons_forward(x, params))
    assert out.shape == (batch, 2)
    assert jnp.allclose(out, ref, atol=1e-4, rtol=1e-4), (
        jnp.max(jnp.abs(out - ref)))

    print("KERNEL_OK")
</pallas_src>

<mosaic_0001>
module attributes {stable_mosaic.version = 11 : i64} {
  func.func @_mlp_kernel(%arg0: i32, %arg1: memref<2x128xf32, #tpu.memory_space<vmem>>, %arg2: memref<64x2xf32, #tpu.memory_space<vmem>>, %arg3: memref<64x1xf32, #tpu.memory_space<vmem>>, %arg4: memref<64x64xf32, #tpu.memory_space<vmem>>, %arg5: memref<64x1xf32, #tpu.memory_space<vmem>>, %arg6: memref<64x2xf32, #tpu.memory_space<vmem>>, %arg7: memref<2x1xf32, #tpu.memory_space<vmem>>, %arg8: memref<2x128xf32, #tpu.memory_space<vmem>>) attributes {dimension_semantics = [#tpu.dimension_semantics<parallel>], iteration_bounds = array<i64: 1>, scalar_prefetch = 0 : i64, scratch_operands = 0 : i64, tpu.core_type = #tpu.core_type<tc>, window_params = [{transform_indices = @transform_0, window_bounds = array<i64: 2, 128>}, {pipeline_mode = #tpu.pipeline_mode<synchronous>, transform_indices = @transform_1, window_bounds = array<i64: 64, 2>}, {pipeline_mode = #tpu.pipeline_mode<synchronous>, transform_indices = @transform_2, window_bounds = array<i64: 64, 1>}, {pipeline_mode = #tpu.pipeline_mode<synchronous>, transform_indices = @transform_3, window_bounds = array<i64: 64, 64>}, {pipeline_mode = #tpu.pipeline_mode<synchronous>, transform_indices = @transform_4, window_bounds = array<i64: 64, 1>}, {pipeline_mode = #tpu.pipeline_mode<synchronous>, transform_indices = @transform_5, window_bounds = array<i64: 64, 2>}, {pipeline_mode = #tpu.pipeline_mode<synchronous>, transform_indices = @transform_6, window_bounds = array<i64: 2, 1>}, {transform_indices = @transform_7, window_bounds = array<i64: 2, 128>}]} {
    %c0 = arith.constant 0 : index
    %c0_0 = arith.constant 0 : index
    %0 = vector.load %arg2[%c0, %c0_0] : memref<64x2xf32, #tpu.memory_space<vmem>>, vector<64x2xf32>
    %c0_1 = arith.constant 0 : index
    %c0_2 = arith.constant 0 : index
    %1 = vector.load %arg3[%c0_1, %c0_2] : memref<64x1xf32, #tpu.memory_space<vmem>>, vector<64x1xf32>
    %c0_3 = arith.constant 0 : index
    %c0_4 = arith.constant 0 : index
    %2 = vector.load %arg4[%c0_3, %c0_4] : memref<64x64xf32, #tpu.memory_space<vmem>>, vector<64x64xf32>
    %c0_5 = arith.constant 0 : index
    %c0_6 = arith.constant 0 : index
    %3 = vector.load %arg5[%c0_5, %c0_6] : memref<64x1xf32, #tpu.memory_space<vmem>>, vector<64x1xf32>
    %c0_7 = arith.constant 0 : index
    %c0_8 = arith.constant 0 : index
    %4 = vector.load %arg6[%c0_7, %c0_8] : memref<64x2xf32, #tpu.memory_space<vmem>>, vector<64x2xf32>
    %c0_9 = arith.constant 0 : index
    %c0_10 = arith.constant 0 : index
    %5 = vector.load %arg7[%c0_9, %c0_10] : memref<2x1xf32, #tpu.memory_space<vmem>>, vector<2x1xf32>
    %c0_i32 = arith.constant 0 : i32
    %c128_i32 = arith.constant 128 : i32
    %6 = arith.muli %c0_i32, %c128_i32 : i32
    %7 = tpu.assume_multiple %6, 128 : i32
    %c0_11 = arith.constant 0 : index
    %8 = arith.index_cast %7 : i32 to index
    %9 = vector.load %arg1[%c0_11, %8] : memref<2x128xf32, #tpu.memory_space<vmem>>, vector<2x128xf32>
    %10 = vector.extract_strided_slice %0 {offsets = [0, 0], sizes = [64, 1], strides = [1, 1]} : vector<64x2xf32> to vector<64x1xf32>
    %11 = vector.extract_strided_slice %9 {offsets = [0, 0], sizes = [1, 128], strides = [1, 1]} : vector<2x128xf32> to vector<1x128xf32>
    %12 = vector.broadcast %10 : vector<64x1xf32> to vector<64x128xf32>
    %13 = vector.broadcast %11 : vector<1x128xf32> to vector<64x128xf32>
    %14 = arith.mulf %12, %13 : vector<64x128xf32>
    %15 = vector.extract_strided_slice %0 {offsets = [0, 1], sizes = [64, 1], strides = [1, 1]} : vector<64x2xf32> to vector<64x1xf32>
    %16 = vector.extract_strided_slice %9 {offsets = [1, 0], sizes = [1, 128], strides = [1, 1]} : vector<2x128xf32> to vector<1x128xf32>
    %17 = vector.broadcast %15 : vector<64x1xf32> to vector<64x128xf32>
    %18 = vector.broadcast %16 : vector<1x128xf32> to vector<64x128xf32>
    %19 = arith.mulf %17, %18 : vector<64x128xf32>
    %20 = arith.addf %14, %19 : vector<64x128xf32>
    %21 = vector.broadcast %1 : vector<64x1xf32> to vector<64x128xf32>
    %22 = arith.addf %20, %21 : vector<64x128xf32>
    %cst = arith.constant 0.000000e+00 : f32
    %23 = vector.broadcast %cst : f32 to vector<64x128xf32>
    %24 = arith.maximumf %22, %23 : vector<64x128xf32>
    %cst_12 = arith.constant dense<0.000000e+00> : vector<64x128xf32>
    %25 = tpu.matmul %2, %24, %cst_12 {dimension_numbers = #tpu.dot_dimension_numbers<[1], [0], [0], [1], [0, 0, 1, 1], [], []>} : vector<64x64xf32>, vector<64x128xf32>, vector<64x128xf32> -> vector<64x128xf32>
    %26 = vector.broadcast %3 : vector<64x1xf32> to vector<64x128xf32>
    %27 = arith.addf %25, %26 : vector<64x128xf32>
    %cst_13 = arith.constant 0.000000e+00 : f32
    %28 = vector.broadcast %cst_13 : f32 to vector<64x128xf32>
    %29 = arith.maximumf %27, %28 : vector<64x128xf32>
    %30 = vector.extract_strided_slice %4 {offsets = [0, 0], sizes = [64, 1], strides = [1, 1]} : vector<64x2xf32> to vector<64x1xf32>
    %31 = vector.broadcast %30 : vector<64x1xf32> to vector<64x128xf32>
    %32 = arith.mulf %29, %31 : vector<64x128xf32>
    %cst_14 = arith.constant dense<0.000000e+00> : vector<128xf32>
    %33 = vector.multi_reduction <add>, %32, %cst_14 [0] : vector<64x128xf32> to vector<128xf32>
    %34 = vector.shape_cast %33 : vector<128xf32> to vector<1x128xf32>
    %35 = vector.extract_strided_slice %4 {offsets = [0, 1], sizes = [64, 1], strides = [1, 1]} : vector<64x2xf32> to vector<64x1xf32>
    %36 = vector.broadcast %35 : vector<64x1xf32> to vector<64x128xf32>
    %37 = arith.mulf %29, %36 : vector<64x128xf32>
    %cst_15 = arith.constant dense<0.000000e+00> : vector<128xf32>
    %38 = vector.multi_reduction <add>, %37, %cst_15 [0] : vector<64x128xf32> to vector<128xf32>
    %39 = vector.shape_cast %38 : vector<128xf32> to vector<1x128xf32>
    %40 = tpu.concatenate %34, %39 in 0 : vector<1x128xf32>, vector<1x128xf32> -> vector<2x128xf32>
    %41 = vector.broadcast %5 : vector<2x1xf32> to vector<2x128xf32>
    %42 = arith.addf %40, %41 : vector<2x128xf32>
    %c0_16 = arith.constant 0 : index
    %43 = arith.index_cast %7 : i32 to index
    %44 = vector.load %arg8[%c0_16, %43] : memref<2x128xf32, #tpu.memory_space<vmem>>, vector<2x128xf32>
    tpu.vector_store %arg8[%c0_16, %43], %42 {strides = array<i32>} : memref<2x128xf32, #tpu.memory_space<vmem>>, vector<2x128xf32>,
    %c1_i32 = arith.constant 1 : i32
    return
  }
  func.func @transform_0(%arg0: i32) -> (i32, i32) {
    %c0_i32 = arith.constant 0 : i32
    %c0_i32_0 = arith.constant 0 : i32
    return %c0_i32, %arg0 : i32, i32
  }
  func.func @transform_1(%arg0: i32) -> (i32, i32) {
    %c0_i32 = arith.constant 0 : i32
    %c0_i32_0 = arith.constant 0 : i32
    %c0_i32_1 = arith.constant 0 : i32
    return %c0_i32, %c0_i32_0 : i32, i32
  }
  func.func @transform_2(%arg0: i32) -> (i32, i32) {
    %c0_i32 = arith.constant 0 : i32
    %c0_i32_0 = arith.constant 0 : i32
    %c0_i32_1 = arith.constant 0 : i32
    return %c0_i32, %c0_i32_0 : i32, i32
  }
  func.func @transform_3(%arg0: i32) -> (i32, i32) {
    %c0_i32 = arith.constant 0 : i32
    %c0_i32_0 = arith.constant 0 : i32
    %c0_i32_1 = arith.constant 0 : i32
    return %c0_i32, %c0_i32_0 : i32, i32
  }
  func.func @transform_4(%arg0: i32) -> (i32, i32) {
    %c0_i32 = arith.constant 0 : i32
    %c0_i32_0 = arith.constant 0 : i32
    %c0_i32_1 = arith.constant 0 : i32
    return %c0_i32, %c0_i32_0 : i32, i32
  }
  func.func @transform_5(%arg0: i32) -> (i32, i32) {
    %c0_i32 = arith.constant 0 : i32
    %c0_i32_0 = arith.constant 0 : i32
    %c0_i32_1 = arith.constant 0 : i32
    return %c0_i32, %c0_i32_0 : i32, i32
  }
  func.func @transform_6(%arg0: i32) -> (i32, i32) {
    %c0_i32 = arith.constant 0 : i32
    %c0_i32_0 = arith.constant 0 : i32
    %c0_i32_1 = arith.constant 0 : i32
    return %c0_i32, %c0_i32_0 : i32, i32
  }
  func.func @transform_7(%arg0: i32) -> (i32, i32) {
    %c0_i32 = arith.constant 0 : i32
    %c0_i32_0 = arith.constant 0 : i32
    return %c0_i32, %arg0 : i32, i32
  }
}

</mosaic_0001>

<bundles_post_ra>
// kernel: tpu_custom_call.1
= control target key start
LH: loop header
LB: loop body
LE: loop exit
PB: predicated region body
PF: predicated region fallthrough
CT: control target
= control target key end

     0   :  { %v552_v3 = vmov 1   ;;  %v553_v4 = vmov 0   ;;  %s759_s0 = inlined_call_operand.vmem [shape: f32[2,128], index: 0, kind: input, shape index: {}]   ;;  %s760_s1 = inlined_call_operand.vmem [shape: f32[64,2], index: 1, kind: input, shape index: {}]   ;;  %s761_s2 = inlined_call_operand.vmem [shape: f32[64,1], index: 2, kind: input, shape index: {}]   ;;  %s762_s3 = inlined_call_operand.vmem [shape: f32[64,64], index: 3, kind: input, shape index: {}]   ;;  %s763_s4 = inlined_call_operand.vmem [shape: f32[64,1], index: 4, kind: input, shape index: {}]   ;;  %s764_s5 = inlined_call_operand.vmem [shape: f32[64,2], index: 5, kind: input, shape index: {}]   ;;  %s765_s6 = inlined_call_operand.vmem [shape: f32[2,1], index: 6, kind: input, shape index: {}]   ;;  %s766_s7 = inlined_call_operand.hbm [shape: f32[2,128], index: 7, kind: output, shape index: {}]  }
   0x1   :  { %v31_v0 = vld [vmem:[%s760_s1 + $0x20] sm:$0xff]  ;;  %v29_v1 = vld [vmem:[%s760_s1 + $0x10] sm:$0xff]  ;;  %v28_v2 = vld [vmem:[%s760_s1 + $0x8] sm:$0xff]  ;;  %514 = vset.pattern.permute.xlu0 %v552_v3  ;;  %512 = vset.pattern.permute.xlu2 %v553_v4 }
   0x2   :  { %511 = vset.pattern.permute.xlu1 %v553_v4  ;;  %91 = vperm.xlu2 %512, %v31_v0  }
   0x3   :  { %12 = vsyncpa [#allocation3], 0  ;;  %81 = vperm.xlu1 %511, %v29_v1   ;;  %123 = vperm.xlu0 %514, %v28_v2   ;;  %v32_v5 = vld [vmem:[%s760_s1 + $0x28] sm:$0xff]  ;;  %v30_v6 = vld [vmem:[%s760_s1 + $0x18] sm:$0xff]  ;;  %vm263_vm0 = vcmask 523264   ;;  %vm451_vm1 = vcmask 1040384  }
   0x4   :  { %v27_v7 = vld [vmem:[%s760_s1] sm:$0xff]  ;;  %v34_v8 = vld [vmem:[%s760_s1 + $0x38] sm:$0xff]  ;;  %v33_v9 = vld [vmem:[%s760_s1 + $0x30] sm:$0xff]  ;;  %s467_s9 = sshll.u32 %s766_s7, 4  ;;  %s468_s9 = int_to_ptr.hbm [resolvable:$true] %s467_s9 }
   0x5   :  { %v42_v10 = vld [vmem:[%s761_s2 + $0x38] sm:$0xff]  ;;  %v39_v11 = vld [vmem:[%s761_s2 + $0x20] sm:$0xff]  ;;  %v41_v12 = vld [vmem:[%s761_s2 + $0x30] sm:$0xff] }
   0x6   :  { %v36_v13 = vld [vmem:[%s761_s2 + $0x8] sm:$0xff]  ;;  %v38_v16 = vld [vmem:[%s761_s2 + $0x18] sm:$0xff]  ;;  %v37_v17 = vld [vmem:[%s761_s2 + $0x10] sm:$0xff] }
   0x7   :  { %v40_v14 = vld [vmem:[%s761_s2 + $0x28] sm:$0xff]  ;;  %v55_v18 = vld [vmem:[%s763_s4 + $0x20] sm:$0xff]  ;;  %v58_v21 = vld [vmem:[%s763_s4 + $0x38] sm:$0xff] }
   0x8   :  { %v52_v15 = vld [vmem:[%s763_s4 + $0x8] sm:$0xff]  ;;  %v35_v19 = vld [vmem:[%s761_s2] sm:$0xff]  ;;  %v53_v22 = vld [vmem:[%s763_s4 + $0x10] sm:$0xff] }
   0x9   :  { %v51_v20 = vld [vmem:[%s763_s4] sm:$0xff]  ;;  %v54_v23 = vld [vmem:[%s763_s4 + $0x18] sm:$0xff]  ;;  %v61_v24 = vld [vmem:[%s764_s5 + $0x10] sm:$0xff] }
   0xa   :  { %96 = vperm.xlu2 %512, %v32_v5   ;;  %v56_v25 = vld [vmem:[%s763_s4 + $0x28] sm:$0xff]  ;;  %v57_v26 = vld [vmem:[%s763_s4 + $0x30] sm:$0xff]  ;;  %v59_v28 = vld [vmem:[%s764_s5] sm:$0xff] }
   0xb   :  { %86 = vperm.xlu1 %511, %v30_v6   ;;  %515 = vset.pattern.permute.xlu0 %v553_v4  ;;  %v64_v27 = vld [vmem:[%s764_s5 + $0x28] sm:$0xff]  ;;  %v62_v31 = vld [vmem:[%s764_s5 + $0x18] sm:$0xff]  ;;  %v63_v32 = vld [vmem:[%s764_s5 + $0x20] sm:$0xff] }
   0xc   :  { %71 = vperm.xlu0 %515, %v27_v7   ;;  %v60_v29 = vld [vmem:[%s764_s5 + $0x8] sm:$0xff]  ;;  %v68_v43 = vld [vmem:[%s759_s0] sm:$0x3] }
   0xd   :  { %v109_v47 = vperm.slane %v68_v43, 0  ;;  %v150_v48 = vperm.slane %v68_v43, 1  ;;  %v46_v43 = vld [vmem:[%s762_s3 + $0x18] sm:$0xff] }
  0x12   :  { %513 = vset.pattern.permute.xlu2 %v552_v3 }
  0x13   :  { %106 = vperm.xlu1 %511, %v34_v8   ;;  %119 = vperm.xlu2 %513, %v27_v7  }
  0x14   :  { %76 = vperm.xlu0 %515, %v28_v2  }
  0x1b   :  { %516 = vset.pattern.permute.xlu1 %v552_v3  ;;  %147 = vperm.xlu2 %513, %v34_v8  }
  0x1c   :  { %127 = vperm.xlu1 %516, %v29_v1   ;;  %101 = vperm.xlu0 %515, %v33_v9  }
  0x23   :  { %139 = vperm.xlu2 %513, %v32_v5  }
  0x24   :  { %143 = vperm.xlu1 %516, %v33_v9   ;;  %204 = vperm.xlu0 %515, %v42_v10  }
  0x2b   :  { %517 = vset.pattern.permute.xlu2 %v553_v4 }
  0x2c   :  { %135 = vperm.xlu1 %516, %v31_v0   ;;  %189 = vperm.xlu0 %515, %v39_v11  }
  0x2d   :  { %199 = vperm.xlu2 %517, %v41_v12  }
  0x34   :  { %131 = vperm.xlu1 %516, %v30_v6   ;;  %174 = vperm.xlu0 %515, %v36_v13  }
  0x35   :  { %194 = vperm.xlu2 %517, %v40_v14  }
  0x3c   :  { %518 = vset.pattern.permute.xlu1 %v553_v4  ;;  %230 = vperm.xlu0 %515, %v52_v15  }
  0x3d   :  { %184 = vperm.xlu1 %518, %v38_v16   ;;  %179 = vperm.xlu2 %517, %v37_v17  }
  0x44   :  { %245 = vperm.xlu0 %515, %v55_v18  }
  0x45   :  { %169 = vperm.xlu1 %518, %v35_v19   ;;  %225 = vperm.xlu2 %517, %v51_v20  }
  0x4c   :  { %260 = vperm.xlu0 %515, %v58_v21  }
  0x4d   :  { %235 = vperm.xlu1 %518, %v53_v22   ;;  %240 = vperm.xlu2 %517, %v54_v23  }
  0x54   :  { %349 = vperm.xlu0 %515, %v61_v24  }
  0x55   :  { %250 = vperm.xlu1 %518, %v56_v25   ;;  %255 = vperm.xlu2 %517, %v57_v26  }
  0x5c   :  { %364 = vperm.xlu0 %515, %v64_v27   ;;  %v92_v30 = vpop.permute.xlu2 %91 }
  0x5d   :  { %339 = vperm.xlu1 %518, %v59_v28   ;;  %344 = vperm.xlu2 %517, %v60_v29   ;;  %v114_v5 = vmul.f32 %v109_v47, %v92_v30 }
  0x64   :  { %521 = vset.pattern.permute.xlu0 %v552_v3  ;;  %v97_v33 = vpop.permute.xlu2 %96 }
  0x65   :  { %354 = vperm.xlu1 %518, %v62_v31   ;;  %359 = vperm.xlu2 %517, %v63_v32   ;;  %v115_v55 = vmul.f32 %v109_v47, %v97_v33 }
  0x66   :  { %407 = vperm.xlu0 %521, %v61_v24   ;;  %v65_v24 = vld [vmem:[%s764_s5 + $0x30] sm:$0xff] }
  0x6d   :  { %519 = vset.pattern.permute.xlu1 %v552_v3  ;;  %520 = vset.pattern.permute.xlu2 %v552_v3  ;;  %v696_v34 = vpop.permute.xlu2 %119 }
  0x6e   :  { %399 = vperm.xlu1 %519, %v59_v28   ;;  %403 = vperm.xlu2 %520, %v60_v29   ;;  %v151_v28 = vmul.f32 %v150_v48, %v696_v34  ;;  %v66_v34 = vld [vmem:[%s764_s5 + $0x38] sm:$0xff] }
  0x6f   :  { %423 = vperm.xlu0 %521, %v65_v24  }
  0x75   :  { %v698_v35 = vpop.permute.xlu1 %81  ;;  %v700_v36 = vpop.permute.xlu0 %123 }
  0x76   :  { %411 = vperm.xlu1 %519, %v62_v31   ;;  %415 = vperm.xlu2 %520, %v63_v32   ;;  %v148_v37 = vpop.permute.xlu2 %147  ;;  %v112_v15 = vmul.f32 %v109_v47, %v698_v35  ;;  %v152_v19 = vmul.f32 %v150_v48, %v700_v36 }
  0x77   :  { %v158_v49 = vmul.f32 %v150_v48, %v148_v37  ;;  %525 = vset.pattern.permute.xlu0 %v553_v4 }
  0x7d   :  { %v87_v38 = vpop.permute.xlu1 %86 }
  0x7e   :  { %v702_v39 = vpop.permute.xlu0 %71  ;;  %419 = vperm.xlu1 %519, %v64_v27   ;;  %522 = vset.pattern.permute.xlu2 %v553_v4  ;;  %v140_v40 = vpop.permute.xlu2 %139  ;;  %v113_v16 = vmul.f32 %v109_v47, %v87_v38  ;;  %v67_v38 = vld [vmem:[%s765_s6] sm:$0x3] }
  0x7f   :  { %v156_v51 = vmul.f32 %v150_v48, %v140_v40  ;;  %369 = vperm.xlu2 %522, %v65_v24   ;;  %v110_v29 = vmul.f32 %v109_v47, %v702_v39  ;;  %v43_v40 = vld [vmem:[%s762_s3] sm:$0xff]  ;;  %455 = vperm.xlu0 %525, %v67_v38  }
  0x81   :  { %v164_v60 = vadd.f32 %v156_v51, %v115_v55  ;;  %v159_v35 = vadd.f32 %v151_v28, %v110_v29 }
  0x85   :  { %v107_v41 = vpop.permute.xlu1 %106 }
  0x86   :  { %v77_v42 = vpop.permute.xlu0 %76  ;;  %523 = vset.pattern.permute.xlu1 %v553_v4  ;;  %v117_v50 = vmul.f32 %v109_v47, %v107_v41  ;;  %v45_v41 = vld [vmem:[%s762_s3 + $0x10] sm:$0xff] }
  0x87   :  { %v200_v44 = vpop.permute.xlu2 %199  ;;  %v111_v17 = vmul.f32 %v109_v47, %v77_v42  ;;  %374 = vperm.xlu1 %523, %v66_v34   ;;  %524 = vset.pattern.permute.xlu2 %v552_v3  ;;  %v47_v42 = vld [vmem:[%s762_s3 + $0x20] sm:$0xff]  ;;  %v49_v4 = vld [vmem:[%s762_s3 + $0x30] sm:$0xff]  ;;  %v44_v3 = vld [vmem:[%s762_s3 + $0x8] sm:$0xff] }
  0x88   :  { %v166_v52 = vadd.f32 %v158_v49, %v117_v50  ;;  %427 = vperm.xlu2 %524, %v66_v34  }
  0x89   :  { %v160_v26 = vadd.f32 %v152_v19, %v111_v17 }
  0x8e   :  { %v128_v45 = vpop.permute.xlu1 %127  ;;  %v102_v46 = vpop.permute.xlu0 %101 }
  0x8f   :  { %v116_v56 = vmul.f32 %v109_v47, %v102_v46  ;;  %v195_v59 = vpop.permute.xlu2 %194  ;;  %v153_v13 = vmul.f32 %v150_v48, %v128_v45  ;;  %v50_v45 = vld [vmem:[%s762_s3 + $0x38] sm:$0xff] }
  0x90   :  { %v212_v63 = vadd.f32 %v195_v59, %v164_v60 }
  0x91   :  { %v161_v20 = vadd.f32 %v153_v13, %v112_v15 }
  0x92   :  { %v220_v6 = vmax.f32 %v212_v63, 0.0 }
  0x96   :  { %v144_v53 = vpop.permute.xlu1 %143  ;;  %v205_v54 = vpop.permute.xlu0 %204 }
  0x97   :  { %v157_v57 = vmul.f32 %v150_v48, %v144_v53  ;;  %v214_v58 = vadd.f32 %v205_v54, %v166_v52  ;;  %v180_v18 = vpop.permute.xlu2 %179 }
  0x98   :  { %v209_v25 = vadd.f32 %v180_v18, %v161_v20 }
  0x99   :  { %v165_v61 = vadd.f32 %v157_v57, %v116_v56  ;;  %v222_v62 = vmax.f32 %v214_v58, 0.0 }
  0x9a   :  { %v217_v32 = vmax.f32 %v209_v25, 0.0 }
  0x9b   :  { %v213_v0 = vadd.f32 %v200_v44, %v165_v61  ;;  %296 = vmatpush.msra.mxu0 %v222_v62  ;;  %484 = vmatpush.msra.mxu1 %v222_v62  ;;  %v48_v44 = vld [vmem:[%s762_s3 + $0x28] sm:$0xff]  ;;  %s554_s3 = smov [#allocation2]  }
  0x9c   :  { %485 = vmatpush.msra.mxu2 %v222_v62  ;;  %486 = vmatpush.msra.mxu3 %v222_v62  ;;  %s465_s30 = sshll.u32 %s554_s3, 4  ;;  %s466_s30 = int_to_ptr.vmem [resolvable:$true] %s465_s30 }
  0x9d   :  { %v221_v1 = vmax.f32 %v213_v0, 0.0 }
  0x9e   :  { %v136_v2 = vpop.permute.xlu1 %135  ;;  %v190_v9 = vpop.permute.xlu0 %189 }
  0x9f   :  { %v155_v7 = vmul.f32 %v150_v48, %v136_v2  ;;  %297 = vmatpush.msra.mxu0 %v221_v1  ;;  %487 = vmatpush.msra.mxu1 %v221_v1  ;;  %v226_v46 = vpop.permute.xlu2 %225 }
  0xa0   :  { %488 = vmatpush.msra.mxu2 %v221_v1  ;;  %489 = vmatpush.msra.mxu3 %v221_v1 }
  0xa1   :  { %v163_v8 = vadd.f32 %v155_v7, %v114_v5  ;;  %298 = vmatpush.msra.mxu0 %v220_v6  ;;  %490 = vmatpush.msra.mxu1 %v220_v6 }
  0xa2   :  { %491 = vmatpush.msra.mxu2 %v220_v6  ;;  %492 = vmatpush.msra.mxu3 %v220_v6 }
  0xa3   :  { %v211_v10 = vadd.f32 %v190_v9, %v163_v8 }
  0xa5   :  { %v219_v11 = vmax.f32 %v211_v10, 0.0 }
  0xa6   :  { %v132_v12 = vpop.permute.xlu1 %131  ;;  %v175_v22 = vpop.permute.xlu0 %174 }
  0xa7   :  { %299 = vmatpush.msra.mxu0 %v219_v11  ;;  %493 = vmatpush.msra.mxu1 %v219_v11  ;;  %v154_v14 = vmul.f32 %v150_v48, %v132_v12  ;;  %v208_v30 = vadd.f32 %v175_v22, %v160_v26  ;;  %v241_v47 = vpop.permute.xlu2 %240 }
  0xa8   :  { %494 = vmatpush.msra.mxu2 %v219_v11  ;;  %495 = vmatpush.msra.mxu3 %v219_v11 }
  0xa9   :  { %v162_v21 = vadd.f32 %v154_v14, %v113_v16  ;;  %v216_v33 = vmax.f32 %v208_v30, 0.0 }
  0xae   :  { %v231_v49 = vpop.permute.xlu0 %230 }
  0xaf   :  { %v185_v23 = vpop.permute.xlu1 %184  ;;  %v256_v50 = vpop.permute.xlu2 %255 }
  0xb0   :  { %v210_v27 = vadd.f32 %v185_v23, %v162_v21 }
  0xb2   :  { %v218_v31 = vmax.f32 %v210_v27, 0.0 }
  0xb4   :  { %300 = vmatpush.msra.mxu0 %v218_v31  ;;  %496 = vmatpush.msra.mxu1 %v218_v31 }
  0xb5   :  { %497 = vmatpush.msra.mxu2 %v218_v31  ;;  %498 = vmatpush.msra.mxu3 %v218_v31 }
  0xb6   :  { %301 = vmatpush.msra.mxu0 %v217_v32  ;;  %499 = vmatpush.msra.mxu1 %v217_v32  ;;  %v246_v52 = vpop.permute.xlu0 %245 }
  0xb7   :  { %500 = vmatpush.msra.mxu2 %v217_v32  ;;  %501 = vmatpush.msra.mxu3 %v217_v32  ;;  %v170_v36 = vpop.permute.xlu1 %169  ;;  %v345_v53 = vpop.permute.xlu2 %344 }
  0xb8   :  { %v207_v37 = vadd.f32 %v170_v36, %v159_v35  ;;  %302 = vmatpush.msra.mxu0 %v216_v33  ;;  %502 = vmatpush.msra.mxu1 %v216_v33 }
  0xb9   :  { %503 = vmatpush.msra.mxu2 %v216_v33  ;;  %504 = vmatpush.msra.mxu3 %v216_v33 }
  0xba   :  { %v215_v39 = vmax.f32 %v207_v37, 0.0 }
  0xbc   :  { %303 = vmatpush.msra.mxu0 %v215_v39  ;;  %505 = vmatpush.msra.mxu1 %v215_v39 }
  0xbd   :  { %506 = vmatpush.msra.mxu2 %v215_v39  ;;  %507 = vmatpush.msra.mxu3 %v215_v39 }
  0xbe   :  { %476 = vmatmul.msk.f32.vlgmr.msra.gmra.mxu0 %vm263_vm0, %v43_v40  ;;  %478 = vmatmul.msk.f32.vlgmr.msra.gmra.mxu1 %vm263_vm0, %v45_v41  ;;  %v261_v55 = vpop.permute.xlu0 %260 }
  0xbf   :  { %480 = vmatmul.msk.f32.vlgmr.msra.gmra.mxu2 %vm263_vm0, %v47_v42  ;;  %482 = vmatmul.msk.f32.vlgmr.msra.gmra.mxu3 %vm263_vm0, %v49_v4  ;;  %v236_v48 = vpop.permute.xlu1 %235  ;;  %v360_v56 = vpop.permute.xlu2 %359 }
  0xc6   :  { %477 = vmatmul.msk.f32.gmra.mxu0 %vm263_vm0, %v44_v3  ;;  %479 = vmatmul.msk.f32.gmra.mxu1 %vm263_vm0, %v46_v43  ;;  %v350_v58 = vpop.permute.xlu0 %349 }
  0xc7   :  { %481 = vmatmul.msk.f32.gmra.mxu2 %vm263_vm0, %v48_v44  ;;  %483 = vmatmul.msk.f32.gmra.mxu3 %vm263_vm0, %v50_v45  ;;  %v251_v51 = vpop.permute.xlu1 %250 }
  0xc8   :  { %v404_v60 = vpop.permute.xlu2 %403 }
  0xce   :  { %v365_v63 = vpop.permute.xlu0 %364 }
  0xcf   :  { %v340_v54 = vpop.permute.xlu1 %339 }
  0xd0   :  { %v416_v1 = vpop.permute.xlu2 %415 }
  0xd7   :  { %v355_v57 = vpop.permute.xlu1 %354 }
  0xd8   :  { %v408_v14 = vpop.permute.xlu0 %407 }
  0xd9   :  { %v370_v18 = vpop.permute.xlu2 %369 }
  0xe0   :  { %v400_v59 = vpop.permute.xlu1 %399 }
  0xe1   :  { %v424_v3 = vpop.permute.xlu0 %423 }
  0xe8   :  { %v412_v0 = vpop.permute.xlu1 %411 }
  0xf0   :  { %v420_v23 = vpop.permute.xlu1 %419 }
 0x13b   :  { %v305_v61 = vpop.f32.mrf.mxu0  ;;  %v311_v62 = vpop.f32.mrf.mxu1 }
 0x13c   :  { %v306_v2 = vadd.f32 %v305_v61, %v226_v46  ;;  %v312_v5 = vadd.f32 %v311_v62, %v236_v48  ;;  %v375_v48 = vpop.permute.xlu1 %374 }
 0x13e   :  { %v329_v8 = vmax.f32 %v306_v2, 0.0  ;;  %v331_v13 = vmax.f32 %v312_v5, 0.0 }
 0x140   :  { %v377_v17 = vmul.f32 %v340_v54, %v329_v8  ;;  %v430_v19 = vmul.f32 %v400_v59, %v329_v8  ;;  %v379_v24 = vmul.f32 %v350_v58, %v331_v13  ;;  %v432_v26 = vmul.f32 %v408_v14, %v331_v13  ;;  %v456_v8 = vpop.permute.xlu0 %455 }
 0x142   :  { %v317_v6 = vpop.f32.mrf.mxu2  ;;  %v323_v7 = vpop.f32.mrf.mxu3 }
 0x143   :  { %v308_v9 = vpop.f32.mrf.mxu0  ;;  %v314_v10 = vpop.f32.mrf.mxu1  ;;  %v318_v15 = vadd.f32 %v317_v6, %v246_v52  ;;  %v324_v25 = vadd.f32 %v323_v7, %v256_v50 }
 0x144   :  { %v309_v11 = vadd.f32 %v308_v9, %v231_v49  ;;  %v315_v12 = vadd.f32 %v314_v10, %v241_v47  ;;  %v428_v49 = vpop.permute.xlu2 %427 }
 0x145   :  { %v333_v27 = vmax.f32 %v318_v15, 0.0  ;;  %v335_v38 = vmax.f32 %v324_v25, 0.0 }
 0x146   :  { %v330_v16 = vmax.f32 %v309_v11, 0.0  ;;  %v332_v22 = vmax.f32 %v315_v12, 0.0 }
 0x147   :  { %v381_v40 = vmul.f32 %v360_v56, %v333_v27  ;;  %v434_v41 = vmul.f32 %v416_v1, %v333_v27  ;;  %v436_v50 = vmul.f32 %v424_v3, %v335_v38 }
 0x148   :  { %v378_v20 = vmul.f32 %v345_v53, %v330_v16  ;;  %v431_v21 = vmul.f32 %v404_v60, %v330_v16  ;;  %v380_v35 = vmul.f32 %v355_v57, %v332_v22  ;;  %v433_v34 = vmul.f32 %v412_v0, %v332_v22 }
 0x14a   :  { %v385_v28 = vadd.f32 %v378_v20, %v377_v17  ;;  %v438_v29 = vadd.f32 %v431_v21, %v430_v19  ;;  %v320_v30 = vpop.f32.mrf.mxu2  ;;  %v326_v31 = vpop.f32.mrf.mxu3 }
 0x14b   :  { %v321_v32 = vadd.f32 %v320_v30, %v251_v51  ;;  %v327_v33 = vadd.f32 %v326_v31, %v261_v55  ;;  %v383_v51 = vmul.f32 %v370_v18, %v335_v38 }
 0x14c   :  { %v386_v36 = vadd.f32 %v385_v28, %v379_v24  ;;  %v439_v37 = vadd.f32 %v438_v29, %v432_v26 }
 0x14d   :  { %v334_v39 = vmax.f32 %v321_v32, 0.0  ;;  %v336_v43 = vmax.f32 %v327_v33, 0.0 }
 0x14e   :  { %v387_v42 = vadd.f32 %v386_v36, %v380_v35  ;;  %v440_v4 = vadd.f32 %v439_v37, %v433_v34 }
 0x14f   :  { %v382_v44 = vmul.f32 %v365_v63, %v334_v39  ;;  %v435_v46 = vmul.f32 %v420_v23, %v334_v39  ;;  %v384_v54 = vmul.f32 %v375_v48, %v336_v43  ;;  %v437_v58 = vmul.f32 %v428_v49, %v336_v43 }
 0x150   :  { %v388_v45 = vadd.f32 %v387_v42, %v381_v40  ;;  %v441_v47 = vadd.f32 %v440_v4, %v434_v41 }
 0x152   :  { %v389_v52 = vadd.f32 %v388_v45, %v382_v44  ;;  %v442_v53 = vadd.f32 %v441_v47, %v435_v46 }
 0x154   :  { %v390_v55 = vadd.f32 %v389_v52, %v383_v51  ;;  %v443_v57 = vadd.f32 %v442_v53, %v436_v50 }
 0x156   :  { %v391_v56 = vadd.f32 %v390_v55, %v384_v54  ;;  %v444_v59 = vadd.f32 %v443_v57, %v437_v58 }
 0x158   :  { %v392_v60 = vrot.slane %v391_v56, 4  ;;  %v445_v61 = vrot.slane %v444_v59, 4 }
 0x15a   :  { %v393_v62 = vadd.f32 %v392_v60, %v391_v56  ;;  %v446_v0 = vadd.f32 %v445_v61, %v444_v59 }
 0x15c   :  { %v394_v63 = vrot.slane %v393_v62, 2  ;;  %v447_v1 = vrot.slane %v446_v0, 2 }
 0x15e   :  { %v395_v2 = vadd.f32 %v394_v63, %v393_v62  ;;  %v448_v5 = vadd.f32 %v447_v1, %v446_v0 }
 0x160   :  { %v396_v6 = vrot.slane %v395_v2, 1  ;;  %v449_v7 = vrot.slane %v448_v5, 1 }
 0x162   :  { %v397_v9 = vadd.f32 %v396_v6, %v395_v2  ;;  %v450_v10 = vadd.f32 %v449_v7, %v448_v5 }
 0x164   :  { %v452_v11 = vsel %vm451_vm1, %v397_v9, %v450_v10 }
 0x165   :  { %v458_v12 = vadd.f32 %v456_v8, %v452_v11 }
 0x167   :  { %459 = vst [vmem:[#allocation2] sm:$0x3] %v458_v12 }
 0x168   :  { %470 = dma.vmem_to_hbm [thread:$0]  %s466_s30, 32, %s468_s9, [#allocation3]  }
 0x169   :  { %550 = dma.done.wait [#allocation3], 32  }
 0x16a   :  { %551 = vsyncadd [#allocation3], 4294967264 }
 0x16b   :  { %475 = vsyncpa [#allocation3], 1 }

</bundles_post_ra>
